<compile_context>
chip_gen: v7x
topology: tpu7x:2x2x1
jax: 0.10.0
libtpu: 0.0.40
codegen_flags: <defaults>
</compile_context>

<pallas_src>
import functools

import jax
import jax.numpy as jnp
from jax.experimental import pallas as pl
from jax.experimental.pallas import tpu as pltpu


_MAX_BM = 2048  # diminishing returns past ~512-1024 rows; keeps compiles cheap


def _vmem_budgets():
    """(working-set budget, vmem_limit_bytes), derived from the chip's VMEM."""
    cap = None
    try:
        cap = getattr(pltpu.get_tpu_info(), "vmem_capacity_bytes", None)
    except Exception:
        cap = None
    if not cap or cap <= 0:
        cap = 64 * 1024 * 1024  # conservative fallback: v7x physical VMEM
    working = int(cap * 0.45)
    limit = min(int(cap * 0.75), 100 * 1024 * 1024)
    return working, limit


def _choose_bm(B, C, in_itemsize, working_budget):
    """Largest multiple-of-8 row tile that fits VMEM, with >=2 blocks for B>=16."""
    if B <= 8:
        return B  # single block; row dim equals the full array dim (allowed)
    # Per-row footprint: 2 inputs x 2 pipeline buffers at the input dtype,
    # ~10 live f32 (row, C) temporaries, and the (row, 128) MXU-sum temporaries.
    bytes_per_row = 4 * C * in_itemsize + 40 * C + 4096
    fixed = 512 * C + (1 << 20)  # ones(C, 128) constant + slack
    cap = max(8, (working_budget - fixed) // bytes_per_row)
    cap = min(cap, _MAX_BM, B)
    if B >= 16:
        # Guarantee >= 2 grid blocks so v7x can shard the batch across both TCs.
        cap = min(cap, max(8, ((B // 2) // 8) * 8))
    return max(8, (cap // 8) * 8)


def _kl_kernel(p_ref, q_ref, out_ref, *, inv_temperature, total_rows, mask_rows):
    bm, C = p_ref.shape

    p = p_ref[...].astype(jnp.float32) * inv_temperature
    q = q_ref[...].astype(jnp.float32) * inv_temperature

    if mask_rows:
        # Ragged tail block: zero the rows past the real batch.  Identical rows
        # (p == q == 0) contribute exactly 0 to the symmetric KL, so no output
        # mask is needed afterwards.
        row = jax.lax.broadcasted_iota(jnp.int32, (bm, C), 0) + pl.program_id(0) * bm
        valid = row < total_rows
        p = jnp.where(valid, p, 0.0)
        q = jnp.where(valid, q, 0.0)

    d = q - p  # equals (lq - lp) up to a per-row constant that cancels exactly

    # Per-tensor numerical-stability maxes: the only cross-lane XLU reductions
    # left (kept per-tensor rather than shared, to stay NaN-safe for any logits).
    ep = jnp.exp(p - jnp.max(p, axis=-1, keepdims=True))
    eq = jnp.exp(q - jnp.max(q, axis=-1, keepdims=True))

    # Lane sums on the MXU: every lane of the (bm, 128) result holds the row
    # sum, so no keepdims lane-broadcast is needed downstream.
    ones_c = jnp.ones((C, 128), jnp.float32)
    s_p = jnp.dot(ep, ones_c, preferred_element_type=jnp.float32)
    s_q = jnp.dot(eq, ones_c, preferred_element_type=jnp.float32)
    a_p = jnp.dot(ep * d, ones_c, preferred_element_type=jnp.float32)
    a_q = jnp.dot(eq * d, ones_c, preferred_element_type=jnp.float32)

    # Per-row symmetric-KL contribution, broadcast across all 128 lanes.
    r = a_q * pl.reciprocal(s_q, approx=True) - a_p * pl.reciprocal(s_p, approx=True)

    # Row fold on the MXU too (no in-kernel reshape/relayout): every element of
    # the (8, 128) output block equals this block's summed contribution.
    fold = jnp.ones((8, bm), jnp.float32)
    out_ref[...] = jnp.dot(fold, r, preferred_element_type=jnp.float32)


def kl_loss(logits_p, logits_q, temperature, *, bm=None):
    """Symmetric temperature-scaled KL loss. logits_*: (B, C). Returns a scalar."""
    B, C = logits_p.shape
    assert logits_q.shape == (B, C)
    # TODO(synk): add a class-axis (C) tiling / online two-pass path for
    # vocab-scale C; this kernel loads full (bm, C) rows.  For best perf pad C
    # to a multiple of 128 at the call site (lane-dense blocks).

    working_budget, vmem_limit = _vmem_budgets()
    itemsize = jnp.dtype(logits_p.dtype).itemsize
    if bm is None:
        bm = _choose_bm(B, C, itemsize, working_budget)
    bm = min(bm, B)
    assert bm >= 1 and (bm % 8 == 0 or bm == B), (B, bm)
    nblk = pl.cdiv(B, bm)
    mask_rows = (B % bm) != 0

    kernel = functools.partial(
        _kl_kernel,
        inv_temperature=1.0 / float(temperature),
        total_rows=B,
        mask_rows=mask_rows,
    )

    partials = pl.pallas_call(
        kernel,
        out_shape=jax.ShapeDtypeStruct((nblk, 8, 128), jnp.float32),
        grid_spec=pltpu.PrefetchScalarGridSpec(
            num_scalar_prefetch=0,
            grid=(nblk,),
            in_specs=[
                pl.BlockSpec((bm, C), lambda i: (i, 0)),
                pl.BlockSpec((bm, C), lambda i: (i, 0)),
            ],
            # Leading dim squeezed: the kernel writes an (8, 128) lane-dense
            # partial per block (all elements of a block partial are equal).
            out_specs=pl.BlockSpec((None, 8, 128), lambda i: (i, 0, 0)),
        ),
        compiler_params=pltpu.CompilerParams(
            # Each grid step owns its output block -> fully parallel batch axis
            # (lets v7x shard the blocks across both TensorCores).
            dimension_semantics=("parallel",),
            vmem_limit_bytes=vmem_limit,
        ),
    )(logits_p, logits_q)

    # Tiny final reduction + batchmean scaling outside the kernel.
    per_block = partials[:, 0, 0]
    return (0.5 / B) * jnp.sum(per_block)


def _reference(logits_p, logits_q, T):
    # Pure-JAX reference of the PyTorch forward.
    p = logits_p.astype(jnp.float32) / T
    q = logits_q.astype(jnp.float32) / T
    lp = jax.nn.log_softmax(p, axis=1)
    lq = jax.nn.log_softmax(q, axis=1)
    sp = jnp.exp(lp)
    sq = jnp.exp(lq)
    B = logits_p.shape[0]
    loss_1 = jnp.sum(sq * (lq - lp)) / B
    loss_2 = jnp.sum(sp * (lp - lq)) / B
    return 0.5 * loss_1 + 0.5 * loss_2


if __name__ == "__main__":
    T = 4.0  # temperature (module __init__ arg)

    key = jax.random.PRNGKey(0)
    kp1, kq1, kp2, kq2, kp3, kq3 = jax.random.split(key, 6)

    # Tolerance note: the lane sums ride the MXU and the softmax denominators
    # use the approx EUP reciprocal; typical error is ~1e-6 but we assert with
    # headroom (a real semantic bug would be off by orders of magnitude more).
    def check(out, ref):
        assert jnp.allclose(out, ref, rtol=1e-3, atol=1e-6), (out, ref)

    # 1) Small classification-style shapes (auto tile -> 2 parallel blocks).
    B, C = 16, 128
    p = jax.random.normal(kp1, (B, C), dtype=jnp.float32)
    q = jax.random.normal(kq1, (B, C), dtype=jnp.float32)
    out = jax.block_until_ready(kl_loss(p, q, T))
    check(out, _reference(p, q, T))

    # 2) Multi-block path with a forced small tile.
    B2, C2 = 32, 256
    p2 = jax.random.normal(kp2, (B2, C2), dtype=jnp.float32)
    q2 = jax.random.normal(kq2, (B2, C2), dtype=jnp.float32)
    out2 = jax.block_until_ready(kl_loss(p2, q2, T, bm=8))
    check(out2, _reference(p2, q2, T))

    # 3) Ragged batch (exercises the cdiv grid + masked tail block).
    B3, C3 = 20, 128
    p3 = jax.random.normal(kp3, (B3, C3), dtype=jnp.float32)
    q3 = jax.random.normal(kq3, (B3, C3), dtype=jnp.float32)
    out3 = jax.block_until_ready(kl_loss(p3, q3, T, bm=8))
    check(out3, _reference(p3, q3, T))

    print("KERNEL_OK")
</pallas_src>

<mosaic_0001>
module attributes {stable_mosaic.version = 11 : i64} {
  func.func @_kl_kernel(%arg0: i32, %arg1: memref<8x128xf32, #tpu.memory_space<vmem>>, %arg2: memref<8x128xf32, #tpu.memory_space<vmem>>, %arg3: memref<1x8x128xf32, #tpu.memory_space<vmem>>) attributes {dimension_semantics = [#tpu.dimension_semantics<parallel>], iteration_bounds = array<i64: 2>, scalar_prefetch = 0 : i64, scratch_operands = 0 : i64, tpu.core_type = #tpu.core_type<tc>, window_params = [{transform_indices = @transform_0, window_bounds = array<i64: 8, 128>}, {transform_indices = @transform_1, window_bounds = array<i64: 8, 128>}, {transform_indices = @transform_2, window_bounds = array<i64: 1, 8, 128>}]} {
    %c0 = arith.constant 0 : index
    %c0_0 = arith.constant 0 : index
    %0 = vector.load %arg1[%c0, %c0_0] : memref<8x128xf32, #tpu.memory_space<vmem>>, vector<8x128xf32>
    %cst = arith.constant 2.500000e-01 : f32
    %1 = vector.broadcast %cst : f32 to vector<8x128xf32>
    %2 = arith.mulf %0, %1 : vector<8x128xf32>
    %c0_1 = arith.constant 0 : index
    %c0_2 = arith.constant 0 : index
    %3 = vector.load %arg2[%c0_1, %c0_2] : memref<8x128xf32, #tpu.memory_space<vmem>>, vector<8x128xf32>
    %cst_3 = arith.constant 2.500000e-01 : f32
    %4 = vector.broadcast %cst_3 : f32 to vector<8x128xf32>
    %5 = arith.mulf %3, %4 : vector<8x128xf32>
    %6 = arith.subf %5, %2 : vector<8x128xf32>
    %cst_4 = arith.constant dense<0xFF800000> : vector<8xf32>
    %7 = vector.multi_reduction <maximumf>, %2, %cst_4 [1] : vector<8x128xf32> to vector<8xf32>
    %8 = vector.shape_cast %7 : vector<8xf32> to vector<8x1xf32>
    %9 = vector.broadcast %8 : vector<8x1xf32> to vector<8x128xf32>
    %10 = arith.subf %2, %9 : vector<8x128xf32>
    %11 = math.exp %10 : vector<8x128xf32>
    %cst_5 = arith.constant dense<0xFF800000> : vector<8xf32>
    %12 = vector.multi_reduction <maximumf>, %5, %cst_5 [1] : vector<8x128xf32> to vector<8xf32>
    %13 = vector.shape_cast %12 : vector<8xf32> to vector<8x1xf32>
    %14 = vector.broadcast %13 : vector<8x1xf32> to vector<8x128xf32>
    %15 = arith.subf %5, %14 : vector<8x128xf32>
    %16 = math.exp %15 : vector<8x128xf32>
    %cst_6 = arith.constant 1.000000e+00 : f32
    %17 = vector.broadcast %cst_6 : f32 to vector<128x128xf32>
    %cst_7 = arith.constant dense<0.000000e+00> : vector<8x128xf32>
    %18 = tpu.matmul %11, %17, %cst_7 {dimension_numbers = #tpu.dot_dimension_numbers<[1], [0], [0], [1], [0, 0, 1, 1], [], []>} : vector<8x128xf32>, vector<128x128xf32>, vector<8x128xf32> -> vector<8x128xf32>
    %cst_8 = arith.constant dense<0.000000e+00> : vector<8x128xf32>
    %19 = tpu.matmul %16, %17, %cst_8 {dimension_numbers = #tpu.dot_dimension_numbers<[1], [0], [0], [1], [0, 0, 1, 1], [], []>} : vector<8x128xf32>, vector<128x128xf32>, vector<8x128xf32> -> vector<8x128xf32>
    %20 = arith.mulf %11, %6 : vector<8x128xf32>
    %cst_9 = arith.constant dense<0.000000e+00> : vector<8x128xf32>
    %21 = tpu.matmul %20, %17, %cst_9 {dimension_numbers = #tpu.dot_dimension_numbers<[1], [0], [0], [1], [0, 0, 1, 1], [], []>} : vector<8x128xf32>, vector<128x128xf32>, vector<8x128xf32> -> vector<8x128xf32>
    %22 = arith.mulf %16, %6 : vector<8x128xf32>
    %cst_10 = arith.constant dense<0.000000e+00> : vector<8x128xf32>
    %23 = tpu.matmul %22, %17, %cst_10 {dimension_numbers = #tpu.dot_dimension_numbers<[1], [0], [0], [1], [0, 0, 1, 1], [], []>} : vector<8x128xf32>, vector<128x128xf32>, vector<8x128xf32> -> vector<8x128xf32>
    %24 = tpu.reciprocal %19 {approx = true} : vector<8x128xf32> -> vector<8x128xf32>
    %25 = arith.mulf %23, %24 : vector<8x128xf32>
    %26 = tpu.reciprocal %18 {approx = true} : vector<8x128xf32> -> vector<8x128xf32>
    %27 = arith.mulf %21, %26 : vector<8x128xf32>
    %28 = arith.subf %25, %27 : vector<8x128xf32>
    %cst_11 = arith.constant 1.000000e+00 : f32
    %29 = vector.broadcast %cst_11 : f32 to vector<8x8xf32>
    %cst_12 = arith.constant dense<0.000000e+00> : vector<8x128xf32>
    %30 = tpu.matmul %29, %28, %cst_12 {dimension_numbers = #tpu.dot_dimension_numbers<[1], [0], [0], [1], [0, 0, 1, 1], [], []>} : vector<8x8xf32>, vector<8x128xf32>, vector<8x128xf32> -> vector<8x128xf32>
    %c0_13 = arith.constant 0 : index
    %c0_14 = arith.constant 0 : index
    %c0_15 = arith.constant 0 : index
    %31 = vector.load %arg3[%c0_13, %c0_14, %c0_15] : memref<1x8x128xf32, #tpu.memory_space<vmem>>, vector<1x8x128xf32>
    %32 = vector.shape_cast %31 : vector<1x8x128xf32> to vector<8x128xf32>
    %33 = vector.shape_cast %30 : vector<8x128xf32> to vector<1x8x128xf32>
    tpu.vector_store %arg3[%c0_13, %c0_14, %c0_15], %33 {strides = array<i32>} : memref<1x8x128xf32, #tpu.memory_space<vmem>>, vector<1x8x128xf32>,
    return
  }
  func.func @transform_0(%arg0: i32) -> (i32, i32) {
    %c0_i32 = arith.constant 0 : i32
    %c0_i32_0 = arith.constant 0 : i32
    return %arg0, %c0_i32 : i32, i32
  }
  func.func @transform_1(%arg0: i32) -> (i32, i32) {
    %c0_i32 = arith.constant 0 : i32
    %c0_i32_0 = arith.constant 0 : i32
    return %arg0, %c0_i32 : i32, i32
  }
  func.func @transform_2(%arg0: i32) -> (i32, i32, i32) {
    %c0_i32 = arith.constant 0 : i32
    %c0_i32_0 = arith.constant 0 : i32
    %c0_i32_1 = arith.constant 0 : i32
    return %arg0, %c0_i32, %c0_i32_0 : i32, i32, i32
  }
}

</mosaic_0001>

<bundles_post_ra>
// kernel: tpu_custom_call.1
= control target key start
LH: loop header
LB: loop body
LE: loop exit
PB: predicated region body
PF: predicated region fallthrough
CT: control target
= control target key end

     0   :  { %7 = vsyncpa [#allocation3], 0  ;;  %s1487_s0 = inlined_call_operand.hbm [shape: f32[16,128], index: 0, kind: input, shape index: {}]   ;;  %s1488_s1 = inlined_call_operand.hbm [shape: f32[16,128], index: 1, kind: input, shape index: {}]   ;;  %s1489_s2 = inlined_call_operand.hbm [shape: f32[2,8,128], index: 2, kind: output, shape index: {}]  }
   0x1   :  { %9 = vsyncpa [#allocation3 + $0x1], 0 }
   0x2   :  { %10 = vsyncpa [#allocation6], 0 }
   0x3   :  { %12 = vsyncpa [#allocation6 + $0x1], 0 }
   0x4   :  { %13 = vsyncpa [#allocation4], 0 }
   0x5   :  { %15 = vsyncpa [#allocation4 + $0x1], 0  ;;  %s1194_s9 = smov 0   ;;  %s1196_s10 = smov 0  }
   0x6   :  { %s1198_s11 = smov 0   ;;  %s1200_s12 = smov 0  }
   0x7 LB: > { %s1215_s13 = sadd.s32 4294967295, %s1169_s12   ;;  %s680_s14 = sadd.s32 4294967294, %s1169_s12   ;;  %s1169_s12 = sphi %s1200_s12, %s1508_s12   ;;  %s1165_s11 = sphi %s1198_s11, %s1507_s11   ;;  %s1161_s10 = sphi %s1196_s10, %s1506_s10   ;;  %s1157_s9 = sphi %s1194_s9, %s1505_s9  }
   0x8   : > { %s1219_s15 = sadd.s32 1, %s1169_s12   ;;  %s28_s16 = sadd.s32 1, %s1165_s11 }
   0x9   : > { %s25_s17 = ssub.s32 %s1169_s12, %s1219_s15  ;;  %p35_p0 = scmp.ne.s32.totalorder %s1165_s11, %s1161_s10 }
   0xa   : > { %p26_p1 = scmp.eq.s32.totalorder %s25_s17, 0  ;;  %p36_p2 = scmp.eq.s32.totalorder %s1169_s12, 0 }
   0xb   : > { %p41_p3 = scmp.ne.s32.totalorder %s1161_s10, %s1157_s9  ;;  %p42_p4 = scmp.eq.s32.totalorder %s1215_s13, 0 }
   0xc   : > { %s1231_s18 = scalar_select %p26_p1, %s1165_s11, %s28_s16  }
   0xd   : > { %p1233_p5 = por %p36_p2, %p35_p0  ;;  %p1237_p6 = por %p42_p4, %p41_p3 }
   0xe   : > { %p91_p7 = scmp.eq.s32.totalorder %s1215_s13, 1  ;;  %p97_p8 = scmp.eq.s32.totalorder %s680_s14, 1 }
   0xf   : > { %s1493_s20 = scalar_select %p1237_p6, 1, 0 }
  0x10   : > { %p992_p10 = scmp.lt.s32.totalorder %s1169_s12, 2  ;;  %p1244_p11 = por %p91_p7, %p35_p0 }
  0x11   : > { %p1248_p12 = por %p97_p8, %p41_p3  ;;  %s1253_s23 = sand.u32 1, %s1165_s11  }
  0x12   : > { %s1494_s21 = scalar_select %p1244_p11, 1, 0 }
  0x13   : > { %s1495_s22 = scalar_select %p1248_p12, 1, 0 }
  0x14   : > { %s684_s24 = sshll.u32 %s1169_s12, 7  ;;  %s683_s25 = sshll.u32 %s1253_s23, 3 }
  0x15   : > { %s1262_s28 = scalar_lea.hbm %s1487_s0, %s684_s24  ;;  %s121_s29 = scalar_lea.vmem [#allocation2], %s683_s25 }
  0x16   : > { %s128_s30 = sshll.u32 %s121_s29, 4  ;;  %p1268_p13 = pnand %p992_p10, %p1233_p5  ;;  %s1272_s30 = int_to_ptr.vmem [resolvable:$true] %s128_s30 }
  0x17   : > { %s118_s4 = scalar_lea.sflag [#allocation3], %s1253_s23  ;;  %s1039_s5 = scalar_lea.hbm %s1262_s28, 128 }
  0x18   : > { %p1040_p2 = scmp.ne.s32.totalorder %s1262_s28, %s1039_s5  ;;  %p1041_p3 = pneg %p1268_p13 }
  0x19   : > { %s1044_s8 = scalar_lea.hbm %s1487_s0, 256  ;;  %p1045_p5 = scmp.lt.u32.totalorder %s1262_s28, %s1487_s0 }
  0x1a   : > { %p1042_p4 = pnand %p1041_p3, %p1040_p2  ;;  %p1046_p8 = scmp.lt.u32.totalorder %s1044_s8, %s1039_s5 }
  0x1b   : > { %p1048_p9 = scmp.lt.u32.totalorder %s1039_s5, %s1262_s28 }
  0x1c   : > { %p1043_p7 = pneg %p1042_p4  ;;  %p1047_p10 = por %p1046_p8, %p1045_p5 }
  0x1e   : > { %p1049_p0 = por %p1048_p9, %p1047_p10 }
  0x20   : > { %p1050_p1 = pnand %p1049_p0, %p1043_p7 }
  0x22   : > { %1053 = shalt.err (!%p1050_p1)
}
  0x23   : > { %s1054_s17 = scalar_lea.vmem %s1272_s30, 128  ;;  %s1171_s19 = smov [#allocation2]  }
  0x24   : > { %p1055_p2 = scmp.ne.s32.totalorder %s1272_s30, %s1054_s17  ;;  %s1059_s26 = sshll.u32 %s1171_s19, 4  ;;  %s1060_s26 = int_to_ptr.vmem [resolvable:$false] %s1059_s26 }
  0x25   : > { %s1061_s27 = scalar_lea.vmem %s1060_s26, 256  ;;  %p1062_p11 = scmp.lt.s32.totalorder %s1272_s30, %s1060_s26 }
  0x26   : > { %p1057_p4 = pnand %p1055_p2, %p1041_p3  ;;  %p1063_p5 = scmp.lt.s32.totalorder %s1061_s27, %s1054_s17 }
  0x28   : > { %p1058_p12 = pneg %p1057_p4  ;;  %p1064_p8 = por %p1063_p5, %p1062_p11 }
  0x2a   : > { %p1065_p9 = pnand %p1064_p8, %p1058_p12 }
  0x2c   : > { %1068 = shalt.err (!%p1065_p9)
}
  0x2d   : > { %984 = dma.hbm_to_vmem [thread:$0]  (!%p1268_p13), %s1262_s28, 128, %s1272_s30, %s118_s4  }
  0x2e   : > { %p1497_p0 = scmp.lt.s32.totalorder %s1169_s12, 3  ;;  %p1498_p1 = scmp.ge.s32.totalorder %s1169_s12, 1 }
  0x2f   : > { %s1315_s7 = scalar_lea.hbm %s1488_s1, %s684_s24  ;;  %s139_s8 = scalar_lea.vmem [#allocation5], %s683_s25 }
  0x30   : > { %p1306_p7 = pnand %p1498_p1, %p1497_p0  ;;  %s146_s14 = sshll.u32 %s139_s8, 4  ;;  %s147_s14 = int_to_ptr.vmem [resolvable:$true] %s146_s14 }
  0x31   : > { %s136_s28 = scalar_lea.sflag [#allocation6], %s1253_s23  ;;  %s1069_s30 = scalar_lea.hbm %s1315_s7, 128 }
  0x32   : > { %s1499_s29 = scalar_select %p1306_p7, 1, 0 }
  0x33   : > { %p1070_p11 = scmp.ne.s32.totalorder %s1315_s7, %s1069_s30  ;;  %s1074_s24 = scalar_lea.hbm %s1488_s1, 256 }
  0x34   : > { %p1075_p2 = scmp.lt.u32.totalorder %s1315_s7, %s1488_s1  ;;  %p1076_p4 = scmp.lt.u32.totalorder %s1074_s24, %s1069_s30 }
  0x35   : > { %p1072_p12 = pnand %p1070_p11, %p1041_p3  ;;  %p1078_p8 = scmp.lt.u32.totalorder %s1069_s30, %s1315_s7 }
  0x36   : > { %p1077_p5 = por %p1076_p4, %p1075_p2 }
  0x37   : > { %p1073_p10 = pneg %p1072_p12 }
  0x38   : > { %p1079_p9 = por %p1078_p8, %p1077_p5 }
  0x3a   : > { %p1080_p0 = pnand %p1079_p9, %p1073_p10 }
  0x3c   : > { %1083 = shalt.err (!%p1080_p0)
}
  0x3d   : > { %s1084_s23 = scalar_lea.vmem %s147_s14, 128  ;;  %s1172_s25 = smov [#allocation5]  }
  0x3e   : > { %p1085_p1 = scmp.ne.s32.totalorder %s147_s14, %s1084_s23  ;;  %s1089_s26 = sshll.u32 %s1172_s25, 4  ;;  %s1090_s26 = int_to_ptr.vmem [resolvable:$false] %s1089_s26 }
  0x3f   : > { %s1091_s27 = scalar_lea.vmem %s1090_s26, 256  ;;  %p1092_p6 = scmp.lt.s32.totalorder %s147_s14, %s1090_s26 }
  0x40   : > { %p1087_p11 = pnand %p1085_p1, %p1041_p3  ;;  %p1093_p7 = scmp.lt.s32.totalorder %s1091_s27, %s1084_s23 }
  0x42   : > { %p1088_p12 = pneg %p1087_p11  ;;  %p1094_p2 = por %p1093_p7, %p1092_p6 }
  0x44   : > { %p1095_p4 = pnand %p1094_p2, %p1088_p12 }
  0x46   : > { %1098 = shalt.err (!%p1095_p4)
}
  0x47   : > { %987 = dma.hbm_to_vmem [thread:$0]  (!%p1268_p13), %s1315_s7, 128, %s147_s14, %s136_s28  }
  0x48   : > { %p1500_p10 = scmp.ne.s32.totalorder %s1499_s29, 0 }
  0x49   : > { %s1342_s5 = sand.u32 (!%p1500_p10), 1, %s1161_s10   ;;  %p1501_p6 = scmp.ne.s32.totalorder (!%p1500_p10), %s1493_s20, 0 }
  0x4a   : > { %155 = sbr.rel (%p1500_p10) target bundleno = 724 (0x2d4), region = 28  ;;  %s1345_s6 = sshll.u32 (!%p1500_p10), %s1342_s5, 3 }
  0x4b   : > { %s158_s8 = scalar_lea.sflag (!%p1500_p10), [#allocation3], %s1342_s5  ;;  %s161_s30 = scalar_lea.vmem (!%p1500_p10), [#allocation2], %s1345_s6 }
  0x51   : > { %1144 = dma.done.wait (%p1501_p6), %s158_s8, 128  }
  0x52   : > { %1146 = vsyncadd (%p1501_p6), %s158_s8, 4294967168  ;;  %s167_s3 = scalar_lea.sflag [#allocation6], %s1342_s5  ;;  %s170_s29 = scalar_lea.vmem [#allocation5], %s1345_s6 }
  0x53   : > { %1148 = dma.done.wait (%p1501_p6), %s167_s3, 128  }
  0x54   : > { %1150 = vsyncadd (%p1501_p6), %s167_s3, 4294967168  ;;  %v1173_v0 = vmov 0.0|0.0   ;;  %v1174_v1 = vmov 1.0|1.0   ;;  %v196_v2 = vld [vmem:[%s161_s30] sm:$0xff]  ;;  %v198_v3 = vld [vmem:[%s170_s29] sm:$0xff] }
  0x55   : > { %911 = vmatprep.subr.bf16.mxu0 %v1173_v0  ;;  %927 = vmatprep.subr.bf16.mxu1 %v1173_v0  ;;  %v1369_v4 = vmul.f32 0.25, %v196_v2  ;;  %v1372_v5 = vmul.f32 0.25, %v198_v3  ;;  %vm1175_vm0 = vmmov 0   ;;  %v1176_v6 = vmov 0.0   ;;  %s195_s20 = scalar_lea.vmem [#allocation7], %s1345_s6  ;;  %s693_s14 = sshll.u32 %s1215_s13, 7 }
  0x56   : > { %912 = vmatpush3.bf16.msra.mxu0 %v1174_v1  ;;  %928 = vmatpush3.bf16.msra.mxu1 %v1174_v1  ;;  %vm498_vm1 = vcmask 64512   ;;  %v1177_v31 = vmov 1.0   ;;  %s587_s7 = sshll.u32 %s195_s20, 4  ;;  %s1445_s16 = scalar_lea.hbm %s1489_s2, %s693_s14  ;;  %s1440_s7 = int_to_ptr.vmem [resolvable:$true] %s587_s7 }
  0x57   : > { %913 = vmatprep.subr.bf16.mxu0 %v1173_v0  ;;  %929 = vmatprep.subr.bf16.mxu1 %v1173_v0  ;;  %v200_v15 = vsub.f32 %v1372_v5, %v1369_v4  ;;  %s574_s24 = scalar_lea.sflag [#allocation4], %s1342_s5  ;;  %s1099_s17 = scalar_lea.vmem %s1440_s7, 128 }
  0x58   : > { %201 = vmax.xlane.f32.xlu0 %v1369_v4  ;;  %798 = vmatprep.mubr.msk.f32.mxu0 %vm1175_vm0, %v1176_v6  ;;  %p1100_p13 = scmp.ne.s32.totalorder %s1440_s7, %s1099_s17  ;;  %p1502_p3 = scmp.ne.s32.totalorder %s1494_s21, 0 }
  0x59   : > { %833 = vmatprep.mubr.msk.f32.mxu1 %vm1175_vm0, %v1176_v6  ;;  %s1178_s13 = smov [#allocation7]  }
  0x5a   : > { %914 = vmatpush3.bf16.msra.mxu0 %v1174_v1  ;;  %930 = vmatpush3.bf16.msra.mxu1 %v1174_v1  ;;  %p1101_p7 = pnand %p1100_p13, %p1502_p3  ;;  %s1103_s19 = sshll.u32 %s1178_s13, 4  ;;  %s1104_s19 = int_to_ptr.vmem [resolvable:$false] %s1103_s19 }
  0x5b   : > { %915 = vmatprep.subr.bf16.mxu0 %v1173_v0  ;;  %931 = vmatprep.subr.bf16.mxu1 %v1173_v0  ;;  %s1105_s23 = scalar_lea.vmem %s1104_s19, 256  ;;  %p1106_p8 = scmp.lt.s32.totalorder %s1440_s7, %s1104_s19 }
  0x5c   : > { %206 = vmax.xlane.f32.xlu0 %v1372_v5  ;;  %p1102_p5 = pneg %p1101_p7  ;;  %p1107_p9 = scmp.lt.s32.totalorder %s1105_s23, %s1099_s17 }
  0x5e   : > { %916 = vmatpush3.bf16.msra.mxu0 %v1174_v1  ;;  %932 = vmatpush3.bf16.msra.mxu1 %v1174_v1  ;;  %p1108_p0 = por %p1107_p9, %p1106_p8 }
  0x5f   : > { %917 = vmatprep.subr.bf16.mxu0 %v1173_v0  ;;  %933 = vmatprep.subr.bf16.mxu1 %v1173_v0 }
  0x60   : > { %p1109_p1 = pnand %p1108_p0, %p1102_p5 }
  0x62   : > { %918 = vmatpush3.bf16.msra.mxu0 %v1174_v1  ;;  %934 = vmatpush3.bf16.msra.mxu1 %v1174_v1 }
  0x63   : > { %919 = vmatprep.subr.bf16.mxu0 %v1173_v0  ;;  %935 = vmatprep.subr.bf16.mxu1 %v1173_v0 }
  0x66   : > { %920 = vmatpush3.bf16.msra.mxu0 %v1174_v1  ;;  %936 = vmatpush3.bf16.msra.mxu1 %v1174_v1 }
  0x67   : > { %921 = vmatprep.subr.bf16.mxu0 %v1173_v0  ;;  %937 = vmatprep.subr.bf16.mxu1 %v1173_v0 }
  0x6a   : > { %922 = vmatpush3.bf16.msra.mxu0 %v1174_v1  ;;  %938 = vmatpush3.bf16.msra.mxu1 %v1174_v1 }
  0x6b   : > { %923 = vmatprep.subr.bf16.mxu0 %v1173_v0  ;;  %939 = vmatprep.subr.bf16.mxu1 %v1173_v0 }
  0x6e   : > { %924 = vmatpush3.bf16.msra.mxu0 %v1174_v1  ;;  %940 = vmatpush3.bf16.msra.mxu1 %v1174_v1 }
  0x6f   : > { %925 = vmatprep.subr.bf16.mxu0 %v1173_v0  ;;  %941 = vmatprep.subr.bf16.mxu1 %v1173_v0 }
  0x72   : > { %926 = vmatpush3.bf16.msra.mxu0 %v1174_v1  ;;  %942 = vmatpush3.bf16.msra.mxu1 %v1174_v1 }
  0x73   : > { %943 = vmatprep.subr.bf16.mxu0 %v1173_v0  ;;  %959 = vmatprep.subr.bf16.mxu1 %v1173_v0 }
  0xe5   : > { %v202_v7 = vpop.xlane.xlu0 %201 }
  0xe6   : > { %v203_v8 = vsub.f32 %v1369_v4, %v202_v7 }
  0xe8   : > { %v204_v9 = vmul.f32 1.442695, %v203_v8 }
  0xe9   : > { %v207_v10 = vpop.xlane.xlu0 %206 }
  0xea   : > { %1031 = vpow2.f32 %v204_v9  ;;  %v208_v11 = vsub.f32 %v1372_v5, %v207_v10 }
  0xec   : > { %v209_v12 = vmul.f32 1.442695, %v208_v11 }
  0xee   : > { %1033 = vpow2.f32 %v209_v12 }
  0xf4   : > { %v1032_v13 = vpop.eup %1031 }
  0xf5   : > { %799 = vmatmul.mubr.f32.vlgmr.msra.gmra.mrb[0].mxu0 %v1032_v13  ;;  %v351_v16 = vmul.f32 %v1032_v13, %v200_v15 }
  0xf6   : > { %944 = vmatpush3.bf16.msra.mxu0 %v1174_v1  ;;  %868 = vmatprep.mubr.msk.f32.mxu0 %vm1175_vm0, %v1176_v6 }
  0xf7   : > { %945 = vmatprep.subr.bf16.mxu0 %v1173_v0 }
  0xf8   : > { %v1034_v14 = vpop.eup %1033 }
  0xf9   : > { %834 = vmatmul.mubr.f32.vlgmr.msra.gmra.mrb[0].mxu1 %v1034_v14  ;;  %v422_v17 = vmul.f32 %v1034_v14, %v200_v15 }
  0xfa   : > { %946 = vmatpush3.bf16.msra.mxu0 %v1174_v1  ;;  %960 = vmatpush3.bf16.msra.mxu1 %v1174_v1 }
  0xfb   : > { %947 = vmatprep.subr.bf16.mxu0 %v1173_v0  ;;  %961 = vmatprep.subr.bf16.mxu1 %v1173_v0 }
  0xfc   : > { %903 = vmatprep.mubr.msk.f32.mxu1 %vm1175_vm0, %v1176_v6 }
  0xfe   : > { %948 = vmatpush3.bf16.msra.mxu0 %v1174_v1  ;;  %962 = vmatpush3.bf16.msra.mxu1 %v1174_v1 }
  0xff   : > { %949 = vmatprep.subr.bf16.mxu0 %v1173_v0  ;;  %963 = vmatprep.subr.bf16.mxu1 %v1173_v0 }
 0x102   : > { %950 = vmatpush3.bf16.msra.mxu0 %v1174_v1  ;;  %964 = vmatpush3.bf16.msra.mxu1 %v1174_v1 }
 0x103   : > { %951 = vmatprep.subr.bf16.mxu0 %v1173_v0  ;;  %965 = vmatprep.subr.bf16.mxu1 %v1173_v0 }
 0x106   : > { %952 = vmatpush3.bf16.msra.mxu0 %v1174_v1  ;;  %966 = vmatpush3.bf16.msra.mxu1 %v1174_v1 }
 0x107   : > { %953 = vmatprep.subr.bf16.mxu0 %v1173_v0  ;;  %967 = vmatprep.subr.bf16.mxu1 %v1173_v0 }
 0x10a   : > { %954 = vmatpush3.bf16.msra.mxu0 %v1174_v1  ;;  %968 = vmatpush3.bf16.msra.mxu1 %v1174_v1 }
 0x10b   : > { %955 = vmatprep.subr.bf16.mxu0 %v1173_v0  ;;  %969 = vmatprep.subr.bf16.mxu1 %v1173_v0 }
 0x10e   : > { %956 = vmatpush3.bf16.msra.mxu0 %v1174_v1  ;;  %970 = vmatpush3.bf16.msra.mxu1 %v1174_v1 }
 0x10f   : > { %957 = vmatprep.subr.bf16.mxu0 %v1173_v0  ;;  %971 = vmatprep.subr.bf16.mxu1 %v1173_v0 }
 0x112   : > { %958 = vmatpush3.bf16.msra.mxu0 %v1174_v1  ;;  %972 = vmatpush3.bf16.msra.mxu1 %v1174_v1 }
 0x113   : > { %973 = vmatprep.subr.bf16.mxu1 %v1173_v0  ;;  %906 = vmatprep.subr.mxu0 %v1176_v6 }
 0x115   : > { %869 = vmatmul.mubr.f32.vlgmr.msra.gmra.mrb[2].mxu0 %v351_v16 }
 0x116   : > { %974 = vmatpush3.bf16.msra.mxu1 %v1174_v1  ;;  %908 = vmatprep.mubr.msk.f32.mxu0 %vm1175_vm0, %v1176_v6 }
 0x119   : > { %904 = vmatmul.mubr.f32.vlgmr.msra.gmra.mrb[2].mxu1 %v422_v17 }
 0x1c8   : > { %v277_v18 = vpop.f32.mrb[0].mxu0 }
 0x1c9   : > { %v800_v19 = vpop.f32.mrb[1].mxu0  ;;  %1035 = vrcp.f32 %v277_v18 }
 0x1cc   : > { %v347_v20 = vpop.f32.mrb[0].mxu1 }
 0x1cd   : > { %v835_v21 = vpop.f32.mrb[1].mxu1  ;;  %1037 = vrcp.f32 %v347_v20 }
 0x1d3   : > { %v1036_v22 = vpop.eup %1035 }
 0x1d7   : > { %v1038_v26 = vpop.eup %1037 }
 0x1e8   : > { %v418_v23 = vpop.f32.mrb[2].mxu0 }
 0x1e9   : > { %v496_v24 = vmul.f32 %v1036_v22, %v418_v23  ;;  %v870_v25 = vpop.f32.mrb[3].mxu0 }
 0x1ec   : > { %v489_v27 = vpop.f32.mrb[2].mxu1 }
 0x1ed   : > { %v494_v28 = vmul.f32 %v1038_v26, %v489_v27  ;;  %v905_v29 = vpop.f32.mrb[3].mxu1 }
 0x1ef   : > { %v497_v30 = vsub.f32 %v494_v28, %v496_v24 }
 0x1f1   : > { %907 = vmatpush3.msra.mxu0 %v497_v30 }
 0x1f2   : > { %909 = vmatmul.mubr.msk.f32.vlgmr.msra.gmra.mrb[4].mxu0 %vm498_vm1, %v1177_v31 }
 0x2c5   : > { %v568_v32 = vpop.f32.mrb[4].mxu0 }
 0x2c6   : > { %572 = vst [vmem:[%s195_s20] sm:$0xff] %v568_v32  ;;  %v910_v33 = vpop.f32.mrb[5].mxu0 }
 0x2c7   : > { %1112 = shalt.err (!%p1109_p1)
}
 0x2c8   : > { %s1113_s25 = scalar_lea.hbm %s1445_s16, 128  ;;  %s1117_s5 = scalar_lea.hbm %s1489_s2, 256 }
 0x2c9   : > { %p1114_p11 = scmp.ne.s32.totalorder %s1445_s16, %s1113_s25  ;;  %p1118_p4 = scmp.lt.u32.totalorder %s1445_s16, %s1489_s2 }
 0x2ca   : > { %p1119_p10 = scmp.lt.u32.totalorder %s1117_s5, %s1113_s25  ;;  %p1121_p13 = scmp.lt.u32.totalorder %s1113_s25, %s1445_s16 }
 0x2cb   : > { %p1115_p12 = pnand %p1114_p11, %p1502_p3 }
 0x2cc   : > { %p1120_p6 = por %p1119_p10, %p1118_p4 }
 0x2cd   : > { %p1116_p2 = pneg %p1115_p12 }
 0x2ce   : > { %p1122_p7 = por %p1121_p13, %p1120_p6 }
 0x2d0   : > { %p1123_p5 = pnand %p1122_p7, %p1116_p2 }
 0x2d2   : > { %1126 = shalt.err (!%p1123_p5)
}
 0x2d3   : > { %979 = dma.vmem_to_hbm [thread:$0]  (%p1502_p3), %s1440_s7, 128, %s1445_s16, %s574_s24  }
 0x2d4 PF: > { %s599_s30 = sand.u32 1, %s1157_s9   ;;  %p1503_p8 = scmp.ne.s32.totalorder %s1495_s22, 0 }
 0x2d5   : > { %p1504_p9 = scmp.ge.s32.totalorder %s1169_s12, 2  ;;  %s600_s3 = scalar_lea.sflag [#allocation4], %s599_s30 }
 0x2d7   : > { %p989_p0 = pnand %p1504_p9, %p1503_p8 }
 0x2d9   : > { %1152 = dma.done.wait (!%p989_p0), %s600_s3, 128  }
 0x2da   : > { %1154 = vsyncadd (!%p989_p0), %s600_s3, 4294967168  ;;  %p18_p1 = scmp.ge.s32.totalorder %s1219_s15, 4   ;;  %s1505_s9 = smov %s1161_s10 }
 0x2db   : > { %s1506_s10 = smov %s1165_s11  ;;  %s1507_s11 = smov %s1231_s18 }
 0x2dc   : > { %s1508_s12 = smov %s1219_s15  ;;  %20 = sbr.rel (!%p18_p1) target bundleno = 7 (0x7), region = 86 }
 0x2e3   :  { %605 = vsyncpa [#allocation3], 1 }
 0x2e4   :  { %607 = vsyncpa [#allocation3 + $0x1], 1 }
 0x2e5   :  { %608 = vsyncpa [#allocation6], 1 }
 0x2e6   :  { %610 = vsyncpa [#allocation6 + $0x1], 1 }
 0x2e7   :  { %611 = vsyncpa [#allocation4], 1 }
 0x2e8   :  { %613 = vsyncpa [#allocation4 + $0x1], 1 }

</bundles_post_ra>
